<compile_context>
chip_gen: v6e
topology: v6e:2x2x1
jax: 0.10.0
libtpu: 0.0.40
codegen_flags: <defaults>
</compile_context>

<pallas_src>
import functools
import math

import jax
import jax.numpy as jnp
from jax.experimental import pallas as pl
from jax.experimental.pallas import tpu as pltpu

EMBED_DIM = 32
NUM_HEADS = 2
GAMMA = 1.0


def _round_up(x, m):
    return ((x + m - 1) // m) * m


def prepare_params(params, seq_len):
    """One-time host-side weight prep (exact algebra, no approximation).

    Folds the whole single-query attention + gate front half into a handful of
    small matrices so the kernel never materializes q / k / v:
      scores_h[b,s] = kv[b,s,:] . (task[b] @ A_h + d_h)
          A_h = scale * Wq_h^T Wk_h,  d_h = scale * bq_h Wk_h
          (the bk_h term is constant over s and cancels in the softmax)
      h1pre = sum_h (broadcast(p_h) * kv_flat) @ GG_h + bg
          GG_h = tile(Wv_h^T @ Wf_h, (S, 1)),  Wf = Wo^T W1^T  (out_proj folded
          into the first gate linear),  bg = bv Wf + bo W1^T + b1
    All per-head A_h / GG_h are pre-tiled across the S chunks of the flat
    [*, S*E] kv layout so the kernel only does dense matmuls + elementwise ops.
    """
    E, H, S = EMBED_DIM, NUM_HEADS, seq_len
    D = E // H
    scale = 1.0 / math.sqrt(D)

    wq, bq = params['wq'], params['bq'][0]
    wk = params['wk']
    wv, bv = params['wv'], params['bv'][0]
    wo, bo = params['wo'], params['bo'][0]
    w1, b1 = params['w1'], params['b1'][0]

    # out_proj folded into the first gate linear (exact)
    wf = wo.T @ w1.T                                   # [E, E]
    bf = bo @ w1.T + b1                                # [E]

    a_parts, d_parts, gg_parts = [], [], []
    for h in range(H):
        sl = slice(h * D, (h + 1) * D)
        wq_h, wk_h, wv_h, wf_h = wq[sl], wk[sl], wv[sl], wf[sl]
        a_h = scale * (wq_h.T @ wk_h)                  # [E, E]
        d_h = scale * (bq[sl] @ wk_h)                  # [E]
        g_h = wv_h.T @ wf_h                            # [E, E]  (Wv_h folded into Wo/W1)
        a_parts.append(jnp.tile(a_h, (1, S)))          # [E, S*E]
        d_parts.append(jnp.tile(d_h, (S,)))            # [S*E]
        gg_parts.append(jnp.tile(g_h, (S, 1)))         # [S*E, E]

    a_all = jnp.concatenate(a_parts, axis=1)           # [E, H*S*E]
    d_all = jnp.concatenate(d_parts)[None, :]          # [1, H*S*E]
    gg = jnp.stack(gg_parts, axis=0)                   # [H, S*E, E]
    bg = (bv @ wf + bf)[None, :]                       # [1, E]

    # 0/1 chunk matrices for the flat [*, S*E] kv layout: segmented reduce /
    # broadcast done on the MXU so every tensor stays lane-dense.
    seg = jnp.arange(S * E) // E
    sel = (seg[:, None] == jnp.arange(S)[None, :]).astype(jnp.float32)   # [S*E, S]
    expand = sel.T                                                        # [S, S*E]

    return dict(a_all=a_all, d_all=d_all, sel=sel, expand=expand, gg=gg,
                bg=bg, w2=params['w2'], b2=params['b2'])


def taenet_kernel(task_ref, kv_ref, a_ref, d_ref, sel_ref, exp_ref,
                  gg_ref, bg_ref, w2_ref, b2_ref, out_ref):
    Bt, E = task_ref.shape
    SE = kv_ref.shape[1]                  # S * E (flat, lane-dense)
    H = gg_ref.shape[0]

    # bf16 HBM stream; upcast once for the VPU elementwise math (v5e has no
    # bf16 VPU/EUP).  All matmuls accumulate in f32.
    task = task_ref[...].astype(jnp.float32)        # [Bt, E]
    kv = kv_ref[...].astype(jnp.float32)            # [Bt, S*E]

    # Per-head scaled "key probes" in kv space, pre-tiled across the S chunks:
    #   c_all[b, h*SE + s*E + e] = scale * (Wk_h^T q_h[b])[e]   (bq via d_all)
    c_all = jnp.dot(task, a_ref[...],
                    preferred_element_type=jnp.float32) + d_ref[...]       # [Bt, H*S*E]

    h1 = bg_ref[...]                                 # [1, E] -> broadcasts over Bt
    for h in range(H):                               # static unroll (H == 2)
        c_h = c_all[:, h * SE:(h + 1) * SE]          # vreg-aligned lane slice
        # scores[b, s] = sum_e kv[b, s*E+e] * c_h[b, s*E+e]   (segmented reduce on MXU)
        scores = jnp.dot(kv * c_h, sel_ref[...],
                         preferred_element_type=jnp.float32)               # [Bt, S]
        m = jnp.max(scores, axis=-1, keepdims=True)
        ex = jnp.exp(scores - m)
        p = ex * pl.reciprocal(jnp.sum(ex, axis=-1, keepdims=True), approx=True)  # [Bt, S]
        # Broadcast each prob across its E-lane chunk (MXU), weight kv, and apply
        # the folded Wv_h -> Wo -> W1 matrix in one matmul.
        p_tiled = jnp.dot(p, exp_ref[...],
                          preferred_element_type=jnp.float32)              # [Bt, S*E]
        h1 = h1 + jnp.dot(p_tiled * kv, gg_ref[h],
                          preferred_element_type=jnp.float32)              # [Bt, E]

    h1 = jnp.maximum(h1, 0.0)
    # Lane-dense output: z emitted as a [1, Bt] row (w2 . h1^T) -> unmasked stores.
    z = jnp.dot(w2_ref[...], h1.T, preferred_element_type=jnp.float32)     # [1, Bt]
    out_ref[...] = (GAMMA * jax.nn.sigmoid(z + b2_ref[...]))[None]         # [1, 1, Bt]


def _vmem_bytes_estimate(batch_tile, S, E, H):
    """Lane-padding-aware VMEM footprint (blocks + weights + f32 intermediates)."""
    lane = 128
    ru = lambda n: _round_up(n, lane)
    # double-buffered I/O blocks (bf16 inputs, f32 output row padded to 8 sublanes)
    blocks = 2 * (batch_tile * ru(S * E) * 2
                  + batch_tile * ru(E) * 2
                  + 8 * ru(batch_tile) * 4)
    # VMEM-resident weights (constant index_map; still 2 buffers, lane-padded)
    weights = 2 * 4 * (E * ru(H * S * E)              # a_all
                       + 8 * ru(H * S * E)            # d_all
                       + S * E * ru(S)                # sel
                       + 8 * ru(S * E)                # expand
                       + H * S * E * ru(E)            # gg
                       + 3 * 8 * lane)                # bg, w2, b2
    # f32 intermediates the compiler keeps/spills in VMEM (kv upcast, c_all,
    # per-head prod / p_tiled / weighted, softmax smalls) -- generous bound.
    interm = 4 * batch_tile * ((1 + H) * S * E + 2 * H * S * E + 8 * lane)
    return blocks + weights + interm


@functools.partial(jax.jit, static_argnames=("batch_tile",))
def taenet_forward(task_embedding, treatment_enhanced_embedding, prepared, *,
                   batch_tile=None):
    B, E = task_embedding.shape
    _, S, _ = treatment_enhanced_embedding.shape
    H = NUM_HEADS
    SE = S * E
    assert prepared['a_all'].shape == (E, H * SE), "prepared params built for a different seq_len"

    # ---- batch tile selection ---------------------------------------------
    # Big tiles amortize the ~0.35 us fixed per-grid-step overhead; once
    # B > 1024 split into >= 2 roughly equal tiles so both v7x TCs get work.
    if batch_tile is None:
        n_tiles = max(1, -(-B // 1024))
        batch_tile = -(-B // n_tiles)
    batch_tile = max(16, _round_up(int(batch_tile), 16))     # bf16 sublane packing
    # Shrink if the footprint would not leave headroom in v7x's 64 MiB VMEM.
    while _vmem_bytes_estimate(batch_tile, S, E, H) > 44 * 2 ** 20 and batch_tile > 128:
        batch_tile = max(128, _round_up(batch_tile // 2, 16))
    Bp = _round_up(B, batch_tile)
    num_tiles = Bp // batch_tile
    vmem_limit = int(min(48 * 2 ** 20,
                         max(32 * 2 ** 20,
                             (_vmem_bytes_estimate(batch_tile, S, E, H) * 3) // 2)))

    # ---- bf16 HBM stream, lane-dense flat kv --------------------------------
    task = task_embedding.astype(jnp.bfloat16)
    kv = treatment_enhanced_embedding.reshape(B, SE).astype(jnp.bfloat16)
    if Bp != B:
        task = jnp.pad(task, ((0, Bp - B), (0, 0)))
        kv = jnp.pad(kv, ((0, Bp - B), (0, 0)))

    const = lambda i: (0, 0)        # weights: constant index_map -> VMEM-resident
    in_specs = [
        pl.BlockSpec((batch_tile, E), lambda i: (i, 0)),       # task (bf16)
        pl.BlockSpec((batch_tile, SE), lambda i: (i, 0)),      # kv, flat lane-dense (bf16)
        pl.BlockSpec((E, H * SE), const),                      # a_all
        pl.BlockSpec((1, H * SE), const),                      # d_all
        pl.BlockSpec((SE, S), const),                          # sel
        pl.BlockSpec((S, SE), const),                          # expand
        pl.BlockSpec((H, SE, E), lambda i: (0, 0, 0)),         # gg
        pl.BlockSpec((1, E), const),                           # bg
        pl.BlockSpec((1, E), const),                           # w2
        pl.BlockSpec((1, 1), const),                           # b2
    ]
    out_specs = pl.BlockSpec((1, 1, batch_tile), lambda i: (i, 0, 0))

    out = pl.pallas_call(
        taenet_kernel,
        out_shape=jax.ShapeDtypeStruct((num_tiles, 1, batch_tile), jnp.float32),
        grid=(num_tiles,),
        in_specs=in_specs,
        out_specs=out_specs,
        compiler_params=pltpu.CompilerParams(
            dimension_semantics=("parallel",),     # batch tiles across v7x's 2 TCs
            vmem_limit_bytes=vmem_limit),
    )(task, kv,
      prepared['a_all'], prepared['d_all'], prepared['sel'], prepared['expand'],
      prepared['gg'], prepared['bg'], prepared['w2'], prepared['b2'])

    return out.reshape(-1)[:B].reshape(B, 1)


def taenet_reference(task, kv, p):
    """Pure-JAX reference implementing the unfused PyTorch semantics."""
    E = task.shape[-1]
    H, D = NUM_HEADS, task.shape[-1] // NUM_HEADS
    scale = 1.0 / math.sqrt(D)
    q = task @ p['wq'].T + p['bq'][0]
    k = kv @ p['wk'].T + p['bk'][0]
    v = kv @ p['wv'].T + p['bv'][0]
    B, S, _ = kv.shape
    qh = q.reshape(B, H, D)
    kh = k.reshape(B, S, H, D)
    vh = v.reshape(B, S, H, D)
    scores = jnp.einsum('bhd,bshd->bhs', qh, kh) * scale
    pr = jax.nn.softmax(scores, axis=-1)
    oh = jnp.einsum('bhs,bshd->bhd', pr, vh)
    o = oh.reshape(B, E)
    attn = o @ p['wo'].T + p['bo'][0]
    h1 = jax.nn.relu(attn @ p['w1'].T + p['b1'][0])
    z = h1 @ p['w2'].T + p['b2'][0]
    return GAMMA * jax.nn.sigmoid(z)


if __name__ == "__main__":
    B, S, E = 2, 8, EMBED_DIM   # S = feature_dim + 1

    key = jax.random.PRNGKey(0)
    keys = jax.random.split(key, 16)

    def init(k, shape, scale=0.1):
        return jax.random.normal(k, shape, dtype=jnp.float32) * scale

    # Parameter shapes follow nn.MultiheadAttention's in_proj/out_proj split
    # and the taegate Linear layers.
    params = {
        'wq': init(keys[0], (E, E)), 'bq': init(keys[1], (1, E)),
        'wk': init(keys[2], (E, E)), 'bk': init(keys[3], (1, E)),
        'wv': init(keys[4], (E, E)), 'bv': init(keys[5], (1, E)),
        'wo': init(keys[6], (E, E)), 'bo': init(keys[7], (1, E)),
        'w1': init(keys[8], (E, E)), 'b1': init(keys[9], (1, E)),
        'w2': init(keys[10], (1, E)), 'b2': init(keys[11], (1, 1)),
    }

    prepared = prepare_params(params, seq_len=S)   # one-time host-side weight prep

    def check(batch, ka, kb, **kw):
        task = jax.random.normal(ka, (batch, E), dtype=jnp.float32)
        kv = jax.random.normal(kb, (batch, S, E), dtype=jnp.float32)
        out = jax.block_until_ready(taenet_forward(task, kv, prepared, **kw))
        # Reference gets the same bf16-rounded inputs the kernel streams from HBM,
        # so the remaining diff is only approx-reciprocal + fold/matmul reordering.
        task_q = task.astype(jnp.bfloat16).astype(jnp.float32)
        kv_q = kv.astype(jnp.bfloat16).astype(jnp.float32)
        ref = taenet_reference(task_q, kv_q, params)
        assert out.shape == (batch, 1), out.shape
        assert bool(jnp.all(jnp.isfinite(out)))
        err = float(jnp.max(jnp.abs(out - ref)))
        assert jnp.allclose(out, ref, atol=2e-3, rtol=2e-3), err

    # small shape from the module spec (batch=2, seq=feature_dim+1=8, embed=32)
    check(2, keys[12], keys[13])
    # multi-tile / padded-batch path (2 parallel grid steps -> both v7x TCs)
    check(1300, keys[14], keys[15])

    print("KERNEL_OK")
</pallas_src>

<mosaic_0001>
module attributes {stable_mosaic.version = 11 : i64} {
  func.func @taenet_kernel(%arg0: i32, %arg1: memref<16x32xbf16, #tpu.memory_space<vmem>>, %arg2: memref<16x256xbf16, #tpu.memory_space<vmem>>, %arg3: memref<32x512xf32, #tpu.memory_space<vmem>>, %arg4: memref<1x512xf32, #tpu.memory_space<vmem>>, %arg5: memref<256x8xf32, #tpu.memory_space<vmem>>, %arg6: memref<8x256xf32, #tpu.memory_space<vmem>>, %arg7: memref<2x256x32xf32, #tpu.memory_space<vmem>>, %arg8: memref<1x32xf32, #tpu.memory_space<vmem>>, %arg9: memref<1x32xf32, #tpu.memory_space<vmem>>, %arg10: memref<1x1xf32, #tpu.memory_space<vmem>>, %arg11: memref<1x1x16xf32, #tpu.memory_space<vmem>>) attributes {dimension_semantics = [#tpu.dimension_semantics<parallel>], iteration_bounds = array<i64: 1>, scalar_prefetch = 0 : i64, scratch_operands = 0 : i64, tpu.core_type = #tpu.core_type<tc>, window_params = [{transform_indices = @transform_0, window_bounds = array<i64: 16, 32>}, {transform_indices = @transform_1, window_bounds = array<i64: 16, 256>}, {pipeline_mode = #tpu.pipeline_mode<synchronous>, transform_indices = @transform_2, window_bounds = array<i64: 32, 512>}, {pipeline_mode = #tpu.pipeline_mode<synchronous>, transform_indices = @transform_3, window_bounds = array<i64: 1, 512>}, {pipeline_mode = #tpu.pipeline_mode<synchronous>, transform_indices = @transform_4, window_bounds = array<i64: 256, 8>}, {pipeline_mode = #tpu.pipeline_mode<synchronous>, transform_indices = @transform_5, window_bounds = array<i64: 8, 256>}, {pipeline_mode = #tpu.pipeline_mode<synchronous>, transform_indices = @transform_6, window_bounds = array<i64: 2, 256, 32>}, {pipeline_mode = #tpu.pipeline_mode<synchronous>, transform_indices = @transform_7, window_bounds = array<i64: 1, 32>}, {pipeline_mode = #tpu.pipeline_mode<synchronous>, transform_indices = @transform_8, window_bounds = array<i64: 1, 32>}, {pipeline_mode = #tpu.pipeline_mode<synchronous>, transform_indices = @transform_9, window_bounds = array<i64: 1, 1>}, {transform_indices = @transform_10, window_bounds = array<i64: 1, 1, 16>}]} {
    %c0 = arith.constant 0 : index
    %c0_0 = arith.constant 0 : index
    %0 = vector.load %arg1[%c0, %c0_0] : memref<16x32xbf16, #tpu.memory_space<vmem>>, vector<16x32xbf16>
    %1 = arith.extf %0 : vector<16x32xbf16> to vector<16x32xf32>
    %c0_1 = arith.constant 0 : index
    %c0_2 = arith.constant 0 : index
    %2 = vector.load %arg2[%c0_1, %c0_2] : memref<16x256xbf16, #tpu.memory_space<vmem>>, vector<16x256xbf16>
    %3 = arith.extf %2 : vector<16x256xbf16> to vector<16x256xf32>
    %c0_3 = arith.constant 0 : index
    %c0_4 = arith.constant 0 : index
    %4 = vector.load %arg3[%c0_3, %c0_4] : memref<32x512xf32, #tpu.memory_space<vmem>>, vector<32x512xf32>
    %cst = arith.constant dense<0.000000e+00> : vector<16x512xf32>
    %5 = tpu.matmul %1, %4, %cst {dimension_numbers = #tpu.dot_dimension_numbers<[1], [0], [0], [1], [0, 0, 1, 1], [], []>} : vector<16x32xf32>, vector<32x512xf32>, vector<16x512xf32> -> vector<16x512xf32>
    %c0_5 = arith.constant 0 : index
    %c0_6 = arith.constant 0 : index
    %6 = vector.load %arg4[%c0_5, %c0_6] : memref<1x512xf32, #tpu.memory_space<vmem>>, vector<1x512xf32>
    %7 = vector.broadcast %6 : vector<1x512xf32> to vector<16x512xf32>
    %8 = arith.addf %5, %7 : vector<16x512xf32>
    %c0_7 = arith.constant 0 : index
    %c0_8 = arith.constant 0 : index
    %9 = vector.load %arg8[%c0_7, %c0_8] : memref<1x32xf32, #tpu.memory_space<vmem>>, vector<1x32xf32>
    %10 = vector.extract_strided_slice %8 {offsets = [0, 0], sizes = [16, 256], strides = [1, 1]} : vector<16x512xf32> to vector<16x256xf32>
    %11 = arith.mulf %3, %10 : vector<16x256xf32>
    %c0_9 = arith.constant 0 : index
    %c0_10 = arith.constant 0 : index
    %12 = vector.load %arg5[%c0_9, %c0_10] : memref<256x8xf32, #tpu.memory_space<vmem>>, vector<256x8xf32>
    %cst_11 = arith.constant dense<0.000000e+00> : vector<16x8xf32>
    %13 = tpu.matmul %11, %12, %cst_11 {dimension_numbers = #tpu.dot_dimension_numbers<[1], [0], [0], [1], [0, 0, 1, 1], [], []>} : vector<16x256xf32>, vector<256x8xf32>, vector<16x8xf32> -> vector<16x8xf32>
    %cst_12 = arith.constant dense<0xFF800000> : vector<16xf32>
    %14 = vector.multi_reduction <maximumf>, %13, %cst_12 [1] : vector<16x8xf32> to vector<16xf32>
    %15 = vector.shape_cast %14 : vector<16xf32> to vector<16x1xf32>
    %16 = vector.broadcast %15 : vector<16x1xf32> to vector<16x8xf32>
    %17 = arith.subf %13, %16 : vector<16x8xf32>
    %18 = math.exp %17 : vector<16x8xf32>
    %cst_13 = arith.constant dense<0.000000e+00> : vector<16xf32>
    %19 = vector.multi_reduction <add>, %18, %cst_13 [1] : vector<16x8xf32> to vector<16xf32>
    %20 = vector.shape_cast %19 : vector<16xf32> to vector<16x1xf32>
    %21 = tpu.reciprocal %20 {approx = true} : vector<16x1xf32> -> vector<16x1xf32>
    %22 = vector.broadcast %21 : vector<16x1xf32> to vector<16x8xf32>
    %23 = arith.mulf %18, %22 : vector<16x8xf32>
    %c0_14 = arith.constant 0 : index
    %c0_15 = arith.constant 0 : index
    %24 = vector.load %arg6[%c0_14, %c0_15] : memref<8x256xf32, #tpu.memory_space<vmem>>, vector<8x256xf32>
    %cst_16 = arith.constant dense<0.000000e+00> : vector<16x256xf32>
    %25 = tpu.matmul %23, %24, %cst_16 {dimension_numbers = #tpu.dot_dimension_numbers<[1], [0], [0], [1], [0, 0, 1, 1], [], []>} : vector<16x8xf32>, vector<8x256xf32>, vector<16x256xf32> -> vector<16x256xf32>
    %26 = arith.mulf %25, %3 : vector<16x256xf32>
    %c0_17 = arith.constant 0 : index
    %c0_18 = arith.constant 0 : index
    %c0_19 = arith.constant 0 : index
    %27 = vector.load %arg7[%c0_17, %c0_18, %c0_19] : memref<2x256x32xf32, #tpu.memory_space<vmem>>, vector<1x256x32xf32>
    %28 = vector.shape_cast %27 : vector<1x256x32xf32> to vector<256x32xf32>
    %cst_20 = arith.constant dense<0.000000e+00> : vector<16x32xf32>
    %29 = tpu.matmul %26, %28, %cst_20 {dimension_numbers = #tpu.dot_dimension_numbers<[1], [0], [0], [1], [0, 0, 1, 1], [], []>} : vector<16x256xf32>, vector<256x32xf32>, vector<16x32xf32> -> vector<16x32xf32>
    %30 = vector.broadcast %9 : vector<1x32xf32> to vector<16x32xf32>
    %31 = arith.addf %30, %29 : vector<16x32xf32>
    %32 = vector.extract_strided_slice %8 {offsets = [0, 256], sizes = [16, 256], strides = [1, 1]} : vector<16x512xf32> to vector<16x256xf32>
    %33 = arith.mulf %3, %32 : vector<16x256xf32>
    %c0_21 = arith.constant 0 : index
    %c0_22 = arith.constant 0 : index
    %34 = vector.load %arg5[%c0_21, %c0_22] : memref<256x8xf32, #tpu.memory_space<vmem>>, vector<256x8xf32>
    %cst_23 = arith.constant dense<0.000000e+00> : vector<16x8xf32>
    %35 = tpu.matmul %33, %34, %cst_23 {dimension_numbers = #tpu.dot_dimension_numbers<[1], [0], [0], [1], [0, 0, 1, 1], [], []>} : vector<16x256xf32>, vector<256x8xf32>, vector<16x8xf32> -> vector<16x8xf32>
    %cst_24 = arith.constant dense<0xFF800000> : vector<16xf32>
    %36 = vector.multi_reduction <maximumf>, %35, %cst_24 [1] : vector<16x8xf32> to vector<16xf32>
    %37 = vector.shape_cast %36 : vector<16xf32> to vector<16x1xf32>
    %38 = vector.broadcast %37 : vector<16x1xf32> to vector<16x8xf32>
    %39 = arith.subf %35, %38 : vector<16x8xf32>
    %40 = math.exp %39 : vector<16x8xf32>
    %cst_25 = arith.constant dense<0.000000e+00> : vector<16xf32>
    %41 = vector.multi_reduction <add>, %40, %cst_25 [1] : vector<16x8xf32> to vector<16xf32>
    %42 = vector.shape_cast %41 : vector<16xf32> to vector<16x1xf32>
    %43 = tpu.reciprocal %42 {approx = true} : vector<16x1xf32> -> vector<16x1xf32>
    %44 = vector.broadcast %43 : vector<16x1xf32> to vector<16x8xf32>
    %45 = arith.mulf %40, %44 : vector<16x8xf32>
    %c0_26 = arith.constant 0 : index
    %c0_27 = arith.constant 0 : index
    %46 = vector.load %arg6[%c0_26, %c0_27] : memref<8x256xf32, #tpu.memory_space<vmem>>, vector<8x256xf32>
    %cst_28 = arith.constant dense<0.000000e+00> : vector<16x256xf32>
    %47 = tpu.matmul %45, %46, %cst_28 {dimension_numbers = #tpu.dot_dimension_numbers<[1], [0], [0], [1], [0, 0, 1, 1], [], []>} : vector<16x8xf32>, vector<8x256xf32>, vector<16x256xf32> -> vector<16x256xf32>
    %48 = arith.mulf %47, %3 : vector<16x256xf32>
    %c1 = arith.constant 1 : index
    %c0_29 = arith.constant 0 : index
    %c0_30 = arith.constant 0 : index
    %49 = vector.load %arg7[%c1, %c0_29, %c0_30] : memref<2x256x32xf32, #tpu.memory_space<vmem>>, vector<1x256x32xf32>
    %50 = vector.shape_cast %49 : vector<1x256x32xf32> to vector<256x32xf32>
    %cst_31 = arith.constant dense<0.000000e+00> : vector<16x32xf32>
    %51 = tpu.matmul %48, %50, %cst_31 {dimension_numbers = #tpu.dot_dimension_numbers<[1], [0], [0], [1], [0, 0, 1, 1], [], []>} : vector<16x256xf32>, vector<256x32xf32>, vector<16x32xf32> -> vector<16x32xf32>
    %52 = arith.addf %31, %51 : vector<16x32xf32>
    %cst_32 = arith.constant 0.000000e+00 : f32
    %53 = vector.broadcast %cst_32 : f32 to vector<16x32xf32>
    %54 = arith.maximumf %52, %53 : vector<16x32xf32>
    %c0_33 = arith.constant 0 : index
    %c0_34 = arith.constant 0 : index
    %55 = vector.load %arg9[%c0_33, %c0_34] : memref<1x32xf32, #tpu.memory_space<vmem>>, vector<1x32xf32>
    %56 = tpu.transpose %54, [1, 0] : vector<16x32xf32> -> vector<32x16xf32>
    %cst_35 = arith.constant dense<0.000000e+00> : vector<1x16xf32>
    %57 = tpu.matmul %55, %56, %cst_35 {dimension_numbers = #tpu.dot_dimension_numbers<[1], [0], [0], [1], [0, 0, 1, 1], [], []>} : vector<1x32xf32>, vector<32x16xf32>, vector<1x16xf32> -> vector<1x16xf32>
    %c0_36 = arith.constant 0 : index
    %c0_37 = arith.constant 0 : index
    %58 = vector.load %arg10[%c0_36, %c0_37] : memref<1x1xf32, #tpu.memory_space<vmem>>, vector<1x1xf32>
    %59 = vector.broadcast %58 : vector<1x1xf32> to vector<1x16xf32>
    %60 = arith.addf %57, %59 : vector<1x16xf32>
    %61 = arith.negf %60 : vector<1x16xf32>
    %62 = math.exp %61 : vector<1x16xf32>
    %cst_38 = arith.constant 1.000000e+00 : f32
    %63 = vector.broadcast %cst_38 : f32 to vector<1x16xf32>
    %64 = arith.addf %63, %62 : vector<1x16xf32>
    %65 = arith.divf %63, %64 : vector<1x16xf32>
    %cst_39 = arith.constant 1.000000e+00 : f32
    %66 = vector.broadcast %cst_39 : f32 to vector<1x16xf32>
    %67 = arith.mulf %66, %65 : vector<1x16xf32>
    %68 = vector.shape_cast %67 : vector<1x16xf32> to vector<1x1x16xf32>
    %c0_40 = arith.constant 0 : index
    %c0_41 = arith.constant 0 : index
    %c0_42 = arith.constant 0 : index
    %69 = vector.load %arg11[%c0_40, %c0_41, %c0_42] : memref<1x1x16xf32, #tpu.memory_space<vmem>>, vector<1x1x16xf32>
    tpu.vector_store %arg11[%c0_40, %c0_41, %c0_42], %68 {strides = array<i32>} : memref<1x1x16xf32, #tpu.memory_space<vmem>>, vector<1x1x16xf32>,
    return
  }
  func.func @transform_0(%arg0: i32) -> (i32, i32) {
    %c0_i32 = arith.constant 0 : i32
    %c0_i32_0 = arith.constant 0 : i32
    return %arg0, %c0_i32 : i32, i32
  }
  func.func @transform_1(%arg0: i32) -> (i32, i32) {
    %c0_i32 = arith.constant 0 : i32
    %c0_i32_0 = arith.constant 0 : i32
    return %arg0, %c0_i32 : i32, i32
  }
  func.func @transform_2(%arg0: i32) -> (i32, i32) {
    %c0_i32 = arith.constant 0 : i32
    %c0_i32_0 = arith.constant 0 : i32
    %c0_i32_1 = arith.constant 0 : i32
    return %c0_i32, %c0_i32_0 : i32, i32
  }
  func.func @transform_3(%arg0: i32) -> (i32, i32) {
    %c0_i32 = arith.constant 0 : i32
    %c0_i32_0 = arith.constant 0 : i32
    %c0_i32_1 = arith.constant 0 : i32
    return %c0_i32, %c0_i32_0 : i32, i32
  }
  func.func @transform_4(%arg0: i32) -> (i32, i32) {
    %c0_i32 = arith.constant 0 : i32
    %c0_i32_0 = arith.constant 0 : i32
    %c0_i32_1 = arith.constant 0 : i32
    return %c0_i32, %c0_i32_0 : i32, i32
  }
  func.func @transform_5(%arg0: i32) -> (i32, i32) {
    %c0_i32 = arith.constant 0 : i32
    %c0_i32_0 = arith.constant 0 : i32
    %c0_i32_1 = arith.constant 0 : i32
    return %c0_i32, %c0_i32_0 : i32, i32
  }
  func.func @transform_6(%arg0: i32) -> (i32, i32, i32) {
    %c0_i32 = arith.constant 0 : i32
    %c0_i32_0 = arith.constant 0 : i32
    %c0_i32_1 = arith.constant 0 : i32
    %c0_i32_2 = arith.constant 0 : i32
    return %c0_i32, %c0_i32_0, %c0_i32_1 : i32, i32, i32
  }
  func.func @transform_7(%arg0: i32) -> (i32, i32) {
    %c0_i32 = arith.constant 0 : i32
    %c0_i32_0 = arith.constant 0 : i32
    %c0_i32_1 = arith.constant 0 : i32
    return %c0_i32, %c0_i32_0 : i32, i32
  }
  func.func @transform_8(%arg0: i32) -> (i32, i32) {
    %c0_i32 = arith.constant 0 : i32
    %c0_i32_0 = arith.constant 0 : i32
    %c0_i32_1 = arith.constant 0 : i32
    return %c0_i32, %c0_i32_0 : i32, i32
  }
  func.func @transform_9(%arg0: i32) -> (i32, i32) {
    %c0_i32 = arith.constant 0 : i32
    %c0_i32_0 = arith.constant 0 : i32
    %c0_i32_1 = arith.constant 0 : i32
    return %c0_i32, %c0_i32_0 : i32, i32
  }
  func.func @transform_10(%arg0: i32) -> (i32, i32, i32) {
    %c0_i32 = arith.constant 0 : i32
    %c0_i32_0 = arith.constant 0 : i32
    %c0_i32_1 = arith.constant 0 : i32
    return %arg0, %c0_i32, %c0_i32_0 : i32, i32, i32
  }
}

</mosaic_0001>

<bundles_post_ra>
// kernel: taenet_forward.1
= control target key start
LH: loop header
LB: loop body
LE: loop exit
PB: predicated region body
PF: predicated region fallthrough
CT: control target
= control target key end

     0   :  { %v1222_v3 = vmov 0.0   ;;  %vm85_vm0 = vcmask 261120   ;;  %v65_v52 = vlaneseq  ;;  %vm358_vm1 = vcmask 64512   ;;  %s1854_s2 = inlined_call_operand.vmem [shape: f32[32,512], index: 2, kind: input, shape index: {}]   ;;  %s1855_s0 = inlined_call_operand.vmem [shape: bf16[16,32], index: 0, kind: input, shape index: {}]   ;;  %s1856_s4 = inlined_call_operand.vmem [shape: f32[256,8], index: 4, kind: input, shape index: {}]   ;;  %s1857_s3 = inlined_call_operand.vmem [shape: f32[1,512], index: 3, kind: input, shape index: {}]   ;;  %s1858_s1 = inlined_call_operand.vmem [shape: bf16[16,256], index: 1, kind: input, shape index: {}]   ;;  %s1859_s5 = inlined_call_operand.vmem [shape: f32[8,256], index: 5, kind: input, shape index: {}]   ;;  %s1860_s6 = inlined_call_operand.vmem [shape: f32[2,256,32], index: 6, kind: input, shape index: {}]   ;;  %s1861_s9 = inlined_call_operand.<no memory space> [shape: f32[1,1], index: 9, kind: input, shape index: {}]   ;;  %s1862_s7 = inlined_call_operand.vmem [shape: f32[1,32], index: 7, kind: input, shape index: {}]   ;;  %s1863_s8 = inlined_call_operand.vmem [shape: f32[1,32], index: 8, kind: input, shape index: {}]   ;;  %s1864_s10 = inlined_call_operand.vmem [shape: f32[1,1,16], index: 10, kind: output, shape index: {}]  }
   0x1   :  { %v60_v0 = vld [vmem:[%s1854_s2 + $0x68] sm:$0xff]  ;;  %v59_v1 = vld [vmem:[%s1854_s2 + $0x60] sm:$0xff]  ;;  %156 = vmatprep.mubr.f32.mxu0 %v1222_v3  ;;  %453 = vmatprep.mubr.f32.mxu1 %v1222_v3  ;;  %v62_v11 = vld [vmem:[%s1854_s2 + $0x78] sm:$0xff]  ;;  %vm1223_vm2 = vmmov 0   ;;  %vm981_vm3 = vcmask 122880  }
   0x2   :  { %v56_v2 = vld [vmem:[%s1854_s2 + $0x48] sm:$0xff]  ;;  %116 = vmatprep.subr.mxu0 %v60_v0  ;;  %v55_v4 = vld [vmem:[%s1854_s2 + $0x40] sm:$0xff]  ;;  %v61_v12 = vld [vmem:[%s1854_s2 + $0x70] sm:$0xff]  ;;  %v1533_v53 = vshrl.u32 %v65_v52, 7 }
   0x3   :  { %117 = vmatpush1.msra.mxu0 %v59_v1  ;;  %v52_v5 = vld [vmem:[%s1854_s2 + $0x28] sm:$0xff]  ;;  %v1033_v6 = vld [vmem:[%s1855_s0] sm:$0xff]   ;;  %v58_v13 = vld [vmem:[%s1854_s2 + $0x58] sm:$0xff] }
   0x4   :  { %118 = vmatprep.subr.mxu0 %v56_v2  ;;  %v51_v7 = vld [vmem:[%s1854_s2 + $0x20] sm:$0xff]  ;;  %v48_v8 = vld [vmem:[%s1854_s2 + $0x8] sm:$0xff]  ;;  %v1034_v10 = vunpack.c.l.bf16 %v1033_v6  ;;  %v1035_v14 = vunpack.c.h.bf16 %v1033_v6  ;;  %v57_v15 = vld [vmem:[%s1854_s2 + $0x50] sm:$0xff]  ;;  %v67_v54 = vsub.s32 0, %v1533_v53  ;;  %v71_v56 = vsub.s32 1, %v1533_v53 }
   0x5   :  { %119 = vmatpush1.msra.mxu0 %v55_v4  ;;  %v47_v9 = vld [vmem:[%s1854_s2] sm:$0xff]  ;;  %v54_v16 = vld [vmem:[%s1854_s2 + $0x38] sm:$0xff]  ;;  %v53_v17 = vld [vmem:[%s1854_s2 + $0x30] sm:$0xff]  ;;  %v79_v4 = vsub.s32 3, %v1533_v53 }
   0x6   :  { %120 = vmatprep.subr.mxu0 %v52_v5  ;;  %v50_v18 = vld [vmem:[%s1854_s2 + $0x18] sm:$0xff]  ;;  %v49_v19 = vld [vmem:[%s1854_s2 + $0x10] sm:$0xff]  ;;  %v1364_v24 = vld [vmem:[%s1856_s4 + $0xe8] sm:$0xff] }
   0x7   :  { %121 = vmatpush1.msra.mxu0 %v51_v7  ;;  %v1340_v20 = vld [vmem:[%s1856_s4 + $0xf8] sm:$0xff]  ;;  %v1350_v22 = vld [vmem:[%s1856_s4 + $0xf0] sm:$0xff]  ;;  %v1370_v25 = vld [vmem:[%s1856_s4 + $0x68] sm:$0xff] }
   0x8   :  { %122 = vmatprep.subr.mxu0 %v48_v8  ;;  %v1345_v21 = vld [vmem:[%s1856_s4 + $0x78] sm:$0xff]  ;;  %v1357_v23 = vld [vmem:[%s1856_s4 + $0x70] sm:$0xff]  ;;  %v1376_v26 = vld [vmem:[%s1856_s4 + $0xe0] sm:$0xff] }
   0x9   :  { %123 = vmatpush1.msra.mxu0 %v47_v9  ;;  %v1383_v27 = vld [vmem:[%s1856_s4 + $0x60] sm:$0xff]  ;;  %v1389_v28 = vld [vmem:[%s1856_s4 + $0xd8] sm:$0xff]  ;;  %v1401_v30 = vld [vmem:[%s1856_s4 + $0xd0] sm:$0xff] }
   0xa   :  { %987 = vmatmul.mubr.msk.f32.vlgmr.msra.gmra.mxu0 %vm85_vm0, %v1034_v10  ;;  %193 = vmatprep.subr.mxu0 %v62_v11  ;;  %v1395_v29 = vld [vmem:[%s1856_s4 + $0x58] sm:$0xff]  ;;  %v1407_v31 = vld [vmem:[%s1856_s4 + $0x50] sm:$0xff]  ;;  %v1413_v32 = vld [vmem:[%s1856_s4 + $0xc8] sm:$0xff] }
   0xb   :  { %162 = vmatprep.mubr.f32.mxu0 %v1222_v3  ;;  %194 = vmatpush1.msra.mxu0 %v61_v12  ;;  %v1419_v33 = vld [vmem:[%s1856_s4 + $0x48] sm:$0xff]  ;;  %v1425_v34 = vld [vmem:[%s1856_s4 + $0xc0] sm:$0xff]  ;;  %v1437_v36 = vld [vmem:[%s1856_s4 + $0xb8] sm:$0xff] }
   0xc   :  { %195 = vmatprep.subr.mxu0 %v58_v13  ;;  %v1431_v35 = vld [vmem:[%s1856_s4 + $0x40] sm:$0xff]  ;;  %v1443_v37 = vld [vmem:[%s1856_s4 + $0x38] sm:$0xff]  ;;  %v1449_v38 = vld [vmem:[%s1856_s4 + $0xb0] sm:$0xff] }
   0xd   :  { %196 = vmatpush1.msra.mxu0 %v57_v15  ;;  %v1455_v39 = vld [vmem:[%s1856_s4 + $0x30] sm:$0xff]  ;;  %v1461_v40 = vld [vmem:[%s1856_s4 + $0xa8] sm:$0xff]  ;;  %v1473_v42 = vld [vmem:[%s1856_s4 + $0xa0] sm:$0xff] }
   0xe   :  { %988 = vmatmul.mubr.msk.f32.gmra.mxu0 %vm85_vm0, %v1035_v14  ;;  %197 = vmatprep.subr.mxu0 %v54_v16  ;;  %v1467_v41 = vld [vmem:[%s1856_s4 + $0x28] sm:$0xff]  ;;  %v1479_v43 = vld [vmem:[%s1856_s4 + $0x20] sm:$0xff]  ;;  %v1485_v44 = vld [vmem:[%s1856_s4 + $0x98] sm:$0xff] }
   0xf   :  { %198 = vmatpush1.msra.mxu0 %v53_v17  ;;  %233 = vmatprep.mubr.f32.mxu0 %v1222_v3  ;;  %v1493_v45 = vld [vmem:[%s1856_s4 + $0x18] sm:$0xff]  ;;  %v1499_v46 = vld [vmem:[%s1856_s4 + $0x90] sm:$0xff]  ;;  %v1511_v48 = vld [vmem:[%s1856_s4 + $0x88] sm:$0xff] }
  0x10   :  { %199 = vmatprep.subr.mxu0 %v50_v18  ;;  %v1505_v47 = vld [vmem:[%s1856_s4 + $0x10] sm:$0xff]  ;;  %v1517_v49 = vld [vmem:[%s1856_s4 + $0x8] sm:$0xff]  ;;  %v1523_v50 = vld [vmem:[%s1856_s4 + $0x80] sm:$0xff] }
  0x11   :  { %200 = vmatpush1.msra.mxu0 %v49_v19  ;;  %v1529_v51 = vld [vmem:[%s1856_s4] sm:$0xff]  ;;  %v42_v2 = vld [vmem:[%s1858_s1 + $0x8] sm:$0xff] }
  0x12   :  { %989 = vmatmul.mubr.msk.f32.vlgmr.msra.gmra.mxu0 %vm85_vm0, %v1034_v10  ;;  %1036 = vmatprep.subr.mxu0 %v1340_v20  ;;  %v63_v55 = vld [vmem:[%s1857_s3] sm:$0xf]  ;;  %v1554_v7 = vunpack.c.h.bf16 %v42_v2  ;;  %v1557_v9 = vunpack.c.l.bf16 %v42_v2 }
  0x13   :  { %239 = vmatprep.mubr.f32.mxu0 %v1222_v3  ;;  %1037 = vmatpush3.msra.mxu0 %v1345_v21  ;;  %v68_v57 = vrot.slane %v63_v55, %v67_v54  ;;  %v41_v58 = vld [vmem:[%s1858_s1] sm:$0xff]  ;;  %v72_v59 = vrot.slane %v63_v55, %v71_v56  ;;  %v80_v13 = vrot.slane %v63_v55, %v79_v4 }
  0x14   :  { %1038 = vmatprep.subr.mxu0 %v1350_v22  ;;  %v1545_v61 = vunpack.c.h.bf16 %v41_v58  ;;  %v1547_v62 = vunpack.c.l.bf16 %v41_v58 }
  0x15   :  { %1039 = vmatpush3.msra.mxu0 %v1357_v23 }
  0x16   :  { %990 = vmatmul.mubr.msk.f32.gmra.mxu0 %vm85_vm0, %v1035_v14  ;;  %1040 = vmatprep.subr.mxu0 %v1364_v24 }
  0x17   :  { %1041 = vmatpush3.msra.mxu0 %v1370_v25 }
  0x18   :  { %1042 = vmatprep.subr.mxu0 %v1376_v26 }
  0x19   :  { %1043 = vmatpush3.msra.mxu0 %v1383_v27 }
  0x1a   :  { %1044 = vmatprep.subr.mxu0 %v1389_v28 }
  0x1b   :  { %1045 = vmatpush3.msra.mxu0 %v1395_v29 }
  0x1c   :  { %1046 = vmatprep.subr.mxu0 %v1401_v30 }
  0x1d   :  { %1047 = vmatpush3.msra.mxu0 %v1407_v31 }
  0x1e   :  { %1048 = vmatprep.subr.mxu0 %v1413_v32 }
  0x1f   :  { %1049 = vmatpush3.msra.mxu0 %v1419_v33 }
  0x20   :  { %1050 = vmatprep.subr.mxu0 %v1425_v34 }
  0x21   :  { %1051 = vmatpush3.msra.mxu0 %v1431_v35 }
  0x22   :  { %1052 = vmatprep.subr.mxu0 %v1437_v36 }
  0x23   :  { %1053 = vmatpush3.msra.mxu0 %v1443_v37 }
  0x24   :  { %1054 = vmatprep.subr.mxu0 %v1449_v38 }
  0x25   :  { %1055 = vmatpush3.msra.mxu0 %v1455_v39 }
  0x26   :  { %1056 = vmatprep.subr.mxu0 %v1461_v40 }
  0x27   :  { %1057 = vmatpush3.msra.mxu0 %v1467_v41 }
  0x28   :  { %1058 = vmatprep.subr.mxu0 %v1473_v42 }
  0x29   :  { %1059 = vmatpush3.msra.mxu0 %v1479_v43 }
  0x2a   :  { %1060 = vmatprep.subr.mxu0 %v1485_v44 }
  0x2b   :  { %1061 = vmatpush3.msra.mxu0 %v1493_v45 }
  0x2c   :  { %1062 = vmatprep.subr.mxu0 %v1499_v46 }
  0x2d   :  { %1063 = vmatpush3.msra.mxu0 %v1505_v47 }
  0x2e   :  { %1064 = vmatprep.subr.mxu0 %v1511_v48 }
  0x2f   :  { %1065 = vmatpush3.msra.mxu0 %v1517_v49 }
  0x30   :  { %1066 = vmatprep.subr.mxu0 %v1523_v50 }
  0x31   :  { %1067 = vmatpush3.msra.mxu0 %v1529_v51 }
  0x32   :  { %1112 = vmatprep.subr.mxu0 %v1340_v20  ;;  %v75_v20 = vsub.s32 2, %v1533_v53 }
  0xca   :  { %v158_v60 = vpop.f32.mrf.mxu0 }
  0xcb   :  { %v159_v63 = vadd.f32 %v158_v60, %v68_v57 }
  0xcc   :  { %v160_v0 = vpop.f32.mrf.mxu0 }
  0xcd   :  { %v161_v1 = vadd.f32 %v160_v0, %v72_v59  ;;  %v247_v8 = vmul.f32 %v159_v63, %v1547_v62  ;;  %v1606_v63 = vld [vmem:[%s1859_s5 + $0x8] sm:$0xff]  ;;  %v1611_v0 = vld [vmem:[%s1859_s5] sm:$0xff] }
  0xce   :  { %v164_v5 = vpop.f32.mrf.mxu0  ;;  %419 = vmatprep.subr.mxu1 %v1606_v63 }
  0xcf   :  { %v248_v6 = vmul.f32 %v161_v1, %v1545_v61  ;;  %v165_v10 = vadd.f32 %v164_v5, %v68_v57  ;;  %420 = vmatpush1.msra.mxu1 %v1611_v0 }
  0xd0   :  { %v166_v11 = vpop.f32.mrf.mxu0 }
  0xd1   :  { %v167_v12 = vadd.f32 %v166_v11, %v72_v59  ;;  %347 = vmatprep.mubr.f32.mxu0 %v248_v6  ;;  %v249_v16 = vmul.f32 %v165_v10, %v1557_v9 }
  0xd2   :  { %348 = vmatmul.mubr.f32.vlgmr.msra.gmra.mxu0 %v247_v8  ;;  %v235_v14 = vpop.f32.mrf.mxu0 }
  0xd3   :  { %v250_v15 = vmul.f32 %v167_v12, %v1554_v7  ;;  %1113 = vmatpush3.msra.mxu0 %v1345_v21 }
  0xd4   :  { %1114 = vmatprep.subr.mxu0 %v1350_v22  ;;  %v237_v17 = vpop.f32.mrf.mxu0  ;;  %v76_v22 = vrot.slane %v63_v55, %v75_v20  ;;  %v484_v20 = vld [vmem:[%s1860_s6 + $0x70] sm:$0xff] }
  0xd5   :  { %1115 = vmatpush3.msra.mxu0 %v1357_v23  ;;  %352 = vmatprep.mubr.f32.mxu0 %v250_v15  ;;  %v238_v18 = vadd.f32 %v237_v17, %v80_v13  ;;  %v501_v17 = vld [vmem:[%s1860_s6 + $0xf8] sm:$0xff] }
  0xd6   :  { %1116 = vmatprep.subr.mxu0 %v1364_v24  ;;  %353 = vmatmul.mubr.f32.gmra.mxu0 %v249_v16  ;;  %v241_v21 = vpop.f32.mrf.mxu0  ;;  %v236_v24 = vadd.f32 %v235_v14, %v76_v22 }
  0xd7   :  { %1117 = vmatpush3.msra.mxu0 %v1370_v25  ;;  %v586_v19 = vmul.f32 %v238_v18, %v1545_v61  ;;  %v485_v18 = vld [vmem:[%s1860_s6 + $0x78] sm:$0xff]  ;;  %1074 = vmatprep.subr.mxu1 %v501_v17  ;;  %v1006_v17 = vld [vmem:[%s1860_s6 + $0x150] sm:$0xff] }
  0xd8   :  { %1118 = vmatprep.subr.mxu0 %v1376_v26  ;;  %v243_v23 = vpop.f32.mrf.mxu0  ;;  %v585_v26 = vmul.f32 %v236_v24, %v1547_v62  ;;  %v482_v24 = vld [vmem:[%s1860_s6 + $0x60] sm:$0xff] }
  0xd9   :  { %1119 = vmatpush3.msra.mxu0 %v1383_v27  ;;  %653 = vmatprep.mubr.f32.mxu0 %v586_v19  ;;  %v244_v25 = vadd.f32 %v243_v23, %v80_v13  ;;  %v242_v27 = vadd.f32 %v241_v21, %v76_v22  ;;  %v500_v19 = vld [vmem:[%s1860_s6 + $0xf0] sm:$0xff]  ;;  %v499_v21 = vld [vmem:[%s1860_s6 + $0xe8] sm:$0xff]  ;;  %v498_v23 = vld [vmem:[%s1860_s6 + $0xe0] sm:$0xff] }
  0xda   :  { %1120 = vmatprep.subr.mxu0 %v1389_v28  ;;  %v483_v22 = vld [vmem:[%s1860_s6 + $0x68] sm:$0xff] }
  0xdb   :  { %1121 = vmatpush3.msra.mxu0 %v1395_v29  ;;  %v588_v28 = vmul.f32 %v244_v25, %v1554_v7  ;;  %v587_v29 = vmul.f32 %v242_v27, %v1557_v9  ;;  %v497_v25 = vld [vmem:[%s1860_s6 + $0xd8] sm:$0xff]  ;;  %v496_v27 = vld [vmem:[%s1860_s6 + $0xd0] sm:$0xff] }
  0xdc   :  { %1122 = vmatprep.subr.mxu0 %v1401_v30 }
  0xdd   :  { %1123 = vmatpush3.msra.mxu0 %v1407_v31 }
  0xde   :  { %1124 = vmatprep.subr.mxu0 %v1413_v32 }
  0xdf   :  { %1125 = vmatpush3.msra.mxu0 %v1419_v33 }
  0xe0   :  { %1126 = vmatprep.subr.mxu0 %v1425_v34 }
  0xe1   :  { %1127 = vmatpush3.msra.mxu0 %v1431_v35 }
  0xe2   :  { %1128 = vmatprep.subr.mxu0 %v1437_v36 }
  0xe3   :  { %1129 = vmatpush3.msra.mxu0 %v1443_v37 }
  0xe4   :  { %1130 = vmatprep.subr.mxu0 %v1449_v38 }
  0xe5   :  { %1131 = vmatpush3.msra.mxu0 %v1455_v39 }
  0xe6   :  { %1132 = vmatprep.subr.mxu0 %v1461_v40 }
  0xe7   :  { %1133 = vmatpush3.msra.mxu0 %v1467_v41 }
  0xe8   :  { %1134 = vmatprep.subr.mxu0 %v1473_v42 }
  0xe9   :  { %1135 = vmatpush3.msra.mxu0 %v1479_v43 }
  0xea   :  { %1136 = vmatprep.subr.mxu0 %v1485_v44 }
  0xeb   :  { %1137 = vmatpush3.msra.mxu0 %v1493_v45 }
  0xec   :  { %1138 = vmatprep.subr.mxu0 %v1499_v46 }
  0xed   :  { %1139 = vmatpush3.msra.mxu0 %v1505_v47 }
  0xee   :  { %1140 = vmatprep.subr.mxu0 %v1511_v48 }
  0xef   :  { %1141 = vmatpush3.msra.mxu0 %v1517_v49 }
  0xf0   :  { %1142 = vmatprep.subr.mxu0 %v1523_v50 }
  0xf1   :  { %1143 = vmatpush3.msra.mxu0 %v1529_v51 }
  0xf2   :  { %654 = vmatmul.mubr.f32.vlgmr.msra.gmra.mxu0 %v585_v26  ;;  %v481_v26 = vld [vmem:[%s1860_s6 + $0x58] sm:$0xff] }
  0xf3   :  { %658 = vmatprep.mubr.f32.mxu0 %v588_v28  ;;  %v480_v28 = vld [vmem:[%s1860_s6 + $0x50] sm:$0xff] }
  0xf6   :  { %659 = vmatmul.mubr.f32.gmra.mxu0 %v587_v29  ;;  %v495_v29 = vld [vmem:[%s1860_s6 + $0xc8] sm:$0xff] }
 0x192   :  { %v1068_v30 = vpop.f32.mrf.mxu0 }
 0x194   :  { %v1069_v31 = vpop.f32.mrf.mxu0 }
 0x195   :  { %v1070_v32 = vadd.f32 %v1069_v31, %v1068_v30  ;;  %v479_v30 = vld [vmem:[%s1860_s6 + $0x48] sm:$0xff]  ;;  %v494_v31 = vld [vmem:[%s1860_s6 + $0xc0] sm:$0xff] }
 0x196   :  { %v1071_v33 = vpop.f32.mrf.mxu0 }
 0x197   :  { %v359_v34 = vsel %vm358_vm1, %v1070_v32, -inf }
 0x198   :  { %v1072_v35 = vpop.f32.mrf.mxu0  ;;  %360 = vmax.xlane.f32.xlu0 %v359_v34  ;;  %v477_v34 = vld [vmem:[%s1860_s6 + $0x38] sm:$0xff] }
 0x199   :  { %v1073_v36 = vadd.f32 %v1072_v35, %v1071_v33  ;;  %v493_v33 = vld [vmem:[%s1860_s6 + $0xb8] sm:$0xff]  ;;  %v492_v35 = vld [vmem:[%s1860_s6 + $0xb0] sm:$0xff] }
 0x19b   :  { %v362_v37 = vsel %vm358_vm1, %v1073_v36, -inf }
 0x19c   :  { %363 = vmax.xlane.f32.xlu0 %v362_v37  ;;  %v491_v37 = vld [vmem:[%s1860_s6 + $0xa8] sm:$0xff] }
 0x1b2   :  { %v1144_v38 = vpop.f32.mrf.mxu0 }
 0x1b4   :  { %v1145_v39 = vpop.f32.mrf.mxu0 }
 0x1b5   :  { %v1146_v40 = vadd.f32 %v1145_v39, %v1144_v38  ;;  %v475_v38 = vld [vmem:[%s1860_s6 + $0x28] sm:$0xff]  ;;  %v490_v39 = vld [vmem:[%s1860_s6 + $0xa0] sm:$0xff] }
 0x1b6   :  { %v1147_v48 = vpop.f32.mrf.mxu0 }
 0x1b7   :  { %v664_v41 = vsel %vm358_vm1, %v1146_v40, -inf }
 0x1b8   :  { %665 = vmax.xlane.f32.xlu0 %v664_v41  ;;  %v1148_v50 = vpop.f32.mrf.mxu0  ;;  %v489_v41 = vld [vmem:[%s1860_s6 + $0x98] sm:$0xff] }
 0x1b9   :  { %v1149_v52 = vadd.f32 %v1148_v50, %v1147_v48  ;;  %v470_v48 = vld [vmem:[%s1860_s6] sm:$0xff] }
 0x1bb   :  { %v667_v57 = vsel %vm358_vm1, %v1149_v52, -inf }
 0x221   :  { %v361_v42 = vpop.xlane.xlu0 %360 }
 0x222   :  { %v365_v43 = vsub.f32 %v1070_v32, %v361_v42  ;;  %v478_v32 = vld [vmem:[%s1860_s6 + $0x40] sm:$0xff]  ;;  %v473_v42 = vld [vmem:[%s1860_s6 + $0x18] sm:$0xff] }
 0x224   :  { %v367_v44 = vmul.f32 1.442695, %v365_v43  ;;  %v488_v43 = vld [vmem:[%s1860_s6 + $0x90] sm:$0xff] }
 0x225   :  { %v364_v45 = vpop.xlane.xlu0 %363 }
 0x226   :  { %1202 = vpow2.f32 %v367_v44  ;;  %v366_v46 = vsub.f32 %v1073_v36, %v364_v45  ;;  %v476_v36 = vld [vmem:[%s1860_s6 + $0x30] sm:$0xff]  ;;  %v487_v45 = vld [vmem:[%s1860_s6 + $0x88] sm:$0xff] }
 0x227   :  { %v472_v44 = vld [vmem:[%s1860_s6 + $0x10] sm:$0xff] }
 0x228   :  { %v369_v47 = vmul.f32 1.442695, %v366_v46  ;;  %v471_v46 = vld [vmem:[%s1860_s6 + $0x8] sm:$0xff] }
 0x22a   :  { %1204 = vpow2.f32 %v369_v47  ;;  %v486_v47 = vld [vmem:[%s1860_s6 + $0x80] sm:$0xff] }
 0x233   :  { %v1203_v49 = vpop.eup %1202 }
 0x234   :  { %v371_v51 = vsel %vm358_vm1, %v1203_v49, 0.0 }
 0x235   :  { %372 = vadd.xlane.f32.xlu1 %v371_v51 }
 0x237   :  { %v1205_v55 = vpop.eup %1204 }
 0x238   :  { %v374_v56 = vsel %vm358_vm1, %v1205_v55, 0.0 }
 0x239   :  { %375 = vadd.xlane.f32.xlu1 %v374_v56 }
 0x23d   :  { %668 = vmax.xlane.f32.xlu1 %v667_v57 }
 0x241   :  { %v666_v58 = vpop.xlane.xlu0 %665 }
 0x242   :  { %v670_v59 = vsub.f32 %v1146_v40, %v666_v58  ;;  %v474_v40 = vld [vmem:[%s1860_s6 + $0x20] sm:$0xff]  ;;  %v1027_v58 = vld [vmem:[%s1860_s6 + $0x1f8] sm:$0xff] }
 0x244   :  { %v672_v60 = vmul.f32 1.442695, %v670_v59 }
 0x246   :  { %1206 = vpow2.f32 %v672_v60 }
 0x253   :  { %v1615_v1 = vpop.eup %1206 }
 0x254   :  { %v676_v2 = vsel %vm358_vm1, %v1615_v1, 0.0 }
 0x255   :  { %677 = vadd.xlane.f32.xlu0 %v676_v2 }
 0x2be   :  { %v373_v4 = vpop.xlane.xlu1 %372 }
 0x2bf   :  { %1208 = vrcp.f32 %v373_v4 }
 0x2c2   :  { %v376_v5 = vpop.xlane.xlu1 %375 }
 0x2c3   :  { %1210 = vrcp.f32 %v376_v5  ;;  %v1011_v5 = vld [vmem:[%s1860_s6 + $0x178] sm:$0xff] }
 0x2c6   :  { %v669_v6 = vpop.xlane.xlu1 %668 }
 0x2c7   :  { %v671_v8 = vsub.f32 %v1149_v52, %v669_v6 }
 0x2c9   :  { %v674_v10 = vmul.f32 1.442695, %v671_v8  ;;  %v1026_v8 = vld [vmem:[%s1860_s6 + $0x1f0] sm:$0xff] }
 0x2cb   :  { %1212 = vpow2.f32 %v674_v10 }
 0x2cc   :  { %v1209_v11 = vpop.eup %1208 }
 0x2cd   :  { %v379_v12 = vmul.f32 %v1209_v11, %v1203_v49  ;;  %v1009_v11 = vld [vmem:[%s1860_s6 + $0x168] sm:$0xff] }
 0x2cf   :  { %991 = vmatmul.mubr.msk.f32.vlgmr.msra.gmra.mxu1 %vm358_vm1, %v379_v12  ;;  %v1024_v12 = vld [vmem:[%s1860_s6 + $0x1e0] sm:$0xff] }
 0x2d0   :  { %v1211_v13 = vpop.eup %1210  ;;  %459 = vmatprep.mubr.f32.mxu1 %v1222_v3  ;;  %1075 = vmatpush3.msra.mxu1 %v485_v18  ;;  %v1021_v18 = vld [vmem:[%s1860_s6 + $0x1c8] sm:$0xff] }
 0x2d1   :  { %v380_v14 = vmul.f32 %v1211_v13, %v1205_v55  ;;  %1076 = vmatprep.subr.mxu1 %v500_v19  ;;  %v1008_v13 = vld [vmem:[%s1860_s6 + $0x160] sm:$0xff]  ;;  %v1005_v19 = vld [vmem:[%s1860_s6 + $0x148] sm:$0xff] }
 0x2d2   :  { %1077 = vmatpush3.msra.mxu1 %v484_v20  ;;  %v1020_v20 = vld [vmem:[%s1860_s6 + $0x1c0] sm:$0xff] }
 0x2d3   :  { %992 = vmatmul.mubr.msk.f32.gmra.mxu1 %vm358_vm1, %v380_v14  ;;  %1078 = vmatprep.subr.mxu1 %v499_v21  ;;  %v1023_v14 = vld [vmem:[%s1860_s6 + $0x1d8] sm:$0xff]  ;;  %v1004_v21 = vld [vmem:[%s1860_s6 + $0x140] sm:$0xff] }
 0x2d4   :  { %1079 = vmatpush3.msra.mxu1 %v483_v22  ;;  %v1019_v22 = vld [vmem:[%s1860_s6 + $0x1b8] sm:$0xff] }
 0x2d5   :  { %1080 = vmatprep.subr.mxu1 %v498_v23  ;;  %v1003_v23 = vld [vmem:[%s1860_s6 + $0x138] sm:$0xff] }
 0x2d6   :  { %1081 = vmatpush3.msra.mxu1 %v482_v24  ;;  %v1018_v24 = vld [vmem:[%s1860_s6 + $0x1b0] sm:$0xff] }
 0x2d7   :  { %1082 = vmatprep.subr.mxu1 %v497_v25  ;;  %v1002_v25 = vld [vmem:[%s1860_s6 + $0x130] sm:$0xff] }
 0x2d8   :  { %v1622_v15 = vpop.eup %1212  ;;  %1083 = vmatpush3.msra.mxu1 %v481_v26  ;;  %v1017_v26 = vld [vmem:[%s1860_s6 + $0x1a8] sm:$0xff] }
 0x2d9   :  { %v679_v16 = vsel %vm358_vm1, %v1622_v15, 0.0  ;;  %1084 = vmatprep.subr.mxu1 %v496_v27  ;;  %v1001_v27 = vld [vmem:[%s1860_s6 + $0x128] sm:$0xff] }
 0x2da   :  { %680 = vadd.xlane.f32.xlu1 %v679_v16  ;;  %1085 = vmatpush3.msra.mxu1 %v480_v28  ;;  %v1022_v16 = vld [vmem:[%s1860_s6 + $0x1d0] sm:$0xff]  ;;  %v1016_v28 = vld [vmem:[%s1860_s6 + $0x1a0] sm:$0xff] }
 0x2db   :  { %1086 = vmatprep.subr.mxu1 %v495_v29  ;;  %v1000_v29 = vld [vmem:[%s1860_s6 + $0x120] sm:$0xff] }
 0x2dc   :  { %1087 = vmatpush3.msra.mxu1 %v479_v30  ;;  %v1015_v30 = vld [vmem:[%s1860_s6 + $0x198] sm:$0xff] }
 0x2dd   :  { %1088 = vmatprep.subr.mxu1 %v494_v31  ;;  %v999_v31 = vld [vmem:[%s1860_s6 + $0x118] sm:$0xff] }
 0x2de   :  { %1089 = vmatpush3.msra.mxu1 %v478_v32  ;;  %v678_v49 = vpop.xlane.xlu0 %677  ;;  %v1014_v32 = vld [vmem:[%s1860_s6 + $0x190] sm:$0xff] }
 0x2df   :  { %1090 = vmatprep.subr.mxu1 %v493_v33  ;;  %1214 = vrcp.f32 %v678_v49  ;;  %v998_v33 = vld [vmem:[%s1860_s6 + $0x110] sm:$0xff] }
 0x2e0   :  { %1091 = vmatpush3.msra.mxu1 %v477_v34  ;;  %v1013_v34 = vld [vmem:[%s1860_s6 + $0x188] sm:$0xff] }
 0x2e1   :  { %1092 = vmatprep.subr.mxu1 %v492_v35  ;;  %v997_v35 = vld [vmem:[%s1860_s6 + $0x108] sm:$0xff] }
 0x2e2   :  { %1093 = vmatpush3.msra.mxu1 %v476_v36  ;;  %v1012_v36 = vld [vmem:[%s1860_s6 + $0x180] sm:$0xff] }
 0x2e3   :  { %1094 = vmatprep.subr.mxu1 %v491_v37  ;;  %v996_v37 = vld [vmem:[%s1860_s6 + $0x100] sm:$0xff] }
 0x2e4   :  { %1095 = vmatpush3.msra.mxu1 %v475_v38 }
 0x2e5   :  { %1096 = vmatprep.subr.mxu1 %v490_v39 }
 0x2e6   :  { %1097 = vmatpush3.msra.mxu1 %v474_v40 }
 0x2e7   :  { %1098 = vmatprep.subr.mxu1 %v489_v41 }
 0x2e8   :  { %1099 = vmatpush3.msra.mxu1 %v473_v42 }
 0x2e9   :  { %1100 = vmatprep.subr.mxu1 %v488_v43 }
 0x2ea   :  { %1101 = vmatpush3.msra.mxu1 %v472_v44 }
 0x2eb   :  { %1102 = vmatprep.subr.mxu1 %v487_v45 }
 0x2ec   :  { %1103 = vmatpush3.msra.mxu1 %v471_v46  ;;  %v1215_v2 = vpop.eup %1214 }
 0x2ed   :  { %1104 = vmatprep.subr.mxu1 %v486_v47  ;;  %v684_v4 = vmul.f32 %v1215_v2, %v1615_v1  ;;  %v1025_v1 = vld [vmem:[%s1860_s6 + $0x1e8] sm:$0xff] }
 0x2ee   :  { %1105 = vmatpush3.msra.mxu1 %v470_v48 }
 0x2ef   :  { %722 = vmatprep.subr.mxu1 %v1606_v63 }
 0x363   :  { %v681_v50 = vpop.xlane.xlu1 %680 }
 0x364   :  { %1216 = vrcp.f32 %v681_v50 }
 0x371   :  { %v1217_v6 = vpop.eup %1216 }
 0x372   :  { %v685_v10 = vmul.f32 %v1217_v6, %v1622_v15  ;;  %v1007_v15 = vld [vmem:[%s1860_s6 + $0x158] sm:$0xff] }
 0x38f   :  { %v455_v51 = vpop.f32.mrf.mxu1 }
 0x390   :  { %v466_v56 = vmul.f32 %v455_v51, %v1547_v62 }
 0x391   :  { %v457_v52 = vpop.f32.mrf.mxu1 }
 0x392   :  { %v467_v55 = vmul.f32 %v457_v52, %v1545_v61  ;;  %v1224_v52 = vmov 0  }
 0x393   :  { %v461_v57 = vpop.f32.mrf.mxu1  ;;  %1201 = vset.pattern.permute.xlu0 %v1224_v52 }
 0x394   :  { %566 = vmatprep.mubr.f32.mxu1 %v467_v55  ;;  %v468_v63 = vmul.f32 %v461_v57, %v1557_v9 }
 0x395   :  { %v463_v59 = vpop.f32.mrf.mxu1  ;;  %567 = vmatmul.mubr.f32.vlgmr.msra.gmra.mxu1 %v466_v56 }
 0x396   :  { %v469_v60 = vmul.f32 %v463_v59, %v1554_v7  ;;  %723 = vmatpush1.msra.mxu1 %v1611_v0  ;;  %v1010_v0 = vld [vmem:[%s1860_s6 + $0x170] sm:$0xff] }
 0x397   :  { %1150 = vmatprep.subr.mxu1 %v1027_v58 }
 0x398   :  { %571 = vmatprep.mubr.f32.mxu1 %v469_v60 }
 0x399   :  { %572 = vmatmul.mubr.f32.gmra.mxu1 %v468_v63 }
 0x39a   :  { %756 = vmatprep.mubr.f32.mxu1 %v1222_v3 }
 0x39d   :  { %994 = vmatmul.mubr.msk.f32.vlgmr.msra.gmra.mxu1 %vm358_vm1, %v684_v4 }
 0x39e   :  { %762 = vmatprep.mubr.f32.mxu1 %v1222_v3  ;;  %1151 = vmatpush3.msra.mxu1 %v1011_v5 }
 0x39f   :  { %1152 = vmatprep.subr.mxu1 %v1026_v8  ;;  %v885_v8 = vld [vmem:[%s1863_s8] sm:$0x1] }
 0x3a0   :  { %1153 = vmatpush3.msra.mxu1 %v1010_v0 }
 0x3a1   :  { %995 = vmatmul.mubr.msk.f32.gmra.mxu1 %vm358_vm1, %v685_v10  ;;  %1154 = vmatprep.subr.mxu1 %v1025_v1 }
 0x3a2   :  { %1155 = vmatpush3.msra.mxu1 %v1009_v11 }
 0x3a3   :  { %1156 = vmatprep.subr.mxu1 %v1024_v12 }
 0x3a4   :  { %1157 = vmatpush3.msra.mxu1 %v1008_v13 }
 0x3a5   :  { %1158 = vmatprep.subr.mxu1 %v1023_v14 }
 0x3a6   :  { %1159 = vmatpush3.msra.mxu1 %v1007_v15 }
 0x3a7   :  { %1160 = vmatprep.subr.mxu1 %v1022_v16 }
 0x3a8   :  { %1161 = vmatpush3.msra.mxu1 %v1006_v17 }
 0x3a9   :  { %1162 = vmatprep.subr.mxu1 %v1021_v18 }
 0x3aa   :  { %1163 = vmatpush3.msra.mxu1 %v1005_v19 }
 0x3ab   :  { %1164 = vmatprep.subr.mxu1 %v1020_v20 }
 0x3ac   :  { %1165 = vmatpush3.msra.mxu1 %v1004_v21 }
 0x3ad   :  { %1166 = vmatprep.subr.mxu1 %v1019_v22 }
 0x3ae   :  { %1167 = vmatpush3.msra.mxu1 %v1003_v23 }
 0x3af   :  { %1168 = vmatprep.subr.mxu1 %v1018_v24 }
 0x3b0   :  { %1169 = vmatpush3.msra.mxu1 %v1002_v25 }
 0x3b1   :  { %1170 = vmatprep.subr.mxu1 %v1017_v26 }
 0x3b2   :  { %1171 = vmatpush3.msra.mxu1 %v1001_v27 }
 0x3b3   :  { %1172 = vmatprep.subr.mxu1 %v1016_v28 }
 0x3b4   :  { %1173 = vmatpush3.msra.mxu1 %v1000_v29 }
 0x3b5   :  { %1174 = vmatprep.subr.mxu1 %v1015_v30 }
 0x3b6   :  { %1175 = vmatpush3.msra.mxu1 %v999_v31 }
 0x3b7   :  { %1176 = vmatprep.subr.mxu1 %v1014_v32 }
 0x3b8   :  { %1177 = vmatpush3.msra.mxu1 %v998_v33 }
 0x3b9   :  { %1178 = vmatprep.subr.mxu1 %v1013_v34 }
 0x3ba   :  { %1179 = vmatpush3.msra.mxu1 %v997_v35 }
 0x3bb   :  { %1180 = vmatprep.subr.mxu1 %v1012_v36 }
 0x3bc   :  { %1181 = vmatpush3.msra.mxu1 %v996_v37 }
 0x3bd   :  { %1191 = vmatprep.subr.mxu1 %v1222_v3 }
 0x455   :  { %v1106_v38 = vpop.f32.mrf.mxu1 }
 0x457   :  { %v1107_v39 = vpop.f32.mrf.mxu1 }
 0x458   :  { %v1108_v40 = vadd.f32 %v1107_v39, %v1106_v38 }
 0x459   :  { %v1109_v41 = vpop.f32.mrf.mxu1 }
 0x45b   :  { %v1110_v42 = vpop.f32.mrf.mxu1 }
 0x45c   :  { %v1111_v43 = vadd.f32 %v1110_v42, %v1109_v41 }
 0x45d   :  { %v758_v44 = vpop.f32.mrf.mxu1 }
 0x45e   :  { %v769_v47 = vmul.f32 %v758_v44, %v1547_v62 }
 0x45f   :  { %v760_v45 = vpop.f32.mrf.mxu1 }
 0x460   :  { %v770_v46 = vmul.f32 %v760_v45, %v1545_v61  ;;  %v15_v61 = vstv %s1861_s9 }
 0x461   :  { %v764_v48 = vpop.f32.mrf.mxu1  ;;  %16 = vst [vmem:[#allocation2] sm:$0x1] %v15_v61 }
 0x462   :  { %870 = vmatprep.mubr.f32.mxu1 %v770_v46  ;;  %v771_v51 = vmul.f32 %v764_v48, %v1557_v9 }
 0x463   :  { %v766_v49 = vpop.f32.mrf.mxu1  ;;  %871 = vmatmul.mubr.f32.vlgmr.msra.gmra.mxu1 %v769_v47 }
 0x464   :  { %v772_v50 = vmul.f32 %v766_v49, %v1554_v7  ;;  %v993_v7 = vld [vmem:[%s1862_s7] ss:$0 sm:$0xff] }
 0x465   :  { %v584_v58 = vadd.f32 %v1111_v43, %v993_v7  ;;  %v583_v63 = vadd.f32 %v1108_v40, %v993_v7 }
 0x466   :  { %875 = vmatprep.mubr.f32.mxu1 %v772_v50 }
 0x467   :  { %876 = vmatmul.mubr.f32.gmra.mxu1 %v771_v51 }
 0x468   :  { %1195 = vmatprep.mubr.msk.f32.mxu1 %vm1223_vm2, %v1222_v3  ;;  %v886_v62 = vld [vmem:[#allocation2] sm:$0x1] }
 0x469   :  { %889 = vperm.xlu0 %1201, %v886_v62  }
 0x4e4   :  { %v890_v0 = vpop.permute.xlu0 %889 }
 0x4e5   :  { %v895_v1 = vrot.slane %v890_v0, %v67_v54 }
 0x523   :  { %v1182_v55 = vpop.f32.mrf.mxu1 }
 0x525   :  { %v1183_v56 = vpop.f32.mrf.mxu1 }
 0x526   :  { %v1184_v59 = vadd.f32 %v1183_v56, %v1182_v55 }
 0x527   :  { %v1185_v57 = vpop.f32.mrf.mxu1 }
 0x528   :  { %v881_v4 = vadd.f32 %v1184_v59, %v583_v63 }
 0x529   :  { %v1186_v9 = vpop.f32.mrf.mxu1 }
 0x52a   :  { %v1187_v60 = vadd.f32 %v1186_v9, %v1185_v57  ;;  %v883_v6 = vmax.f32 %v881_v4, 0.0 }
 0x52c   :  { %v882_v2 = vadd.f32 %v1187_v60, %v584_v58 }
 0x52e   :  { %v884_v5 = vmax.f32 %v882_v2, 0.0 }
 0x530   :  { %1192 = vmatpush3.xpose.msk.msra.mxu1 %vm85_vm0, %v884_v5 }
 0x531   :  { %1193 = vmatprep.subr.mxu1 %v1222_v3 }
 0x534   :  { %1194 = vmatpush3.xpose.msk.msra.mxu1 %vm85_vm0, %v883_v6 }
 0x537   :  { %1196 = vmatmul.mubr.msk.f32.vlgmr.msra.gmra.mxu1 %vm85_vm0, %v885_v8 }
 0x5f7   :  { %v971_v10 = vpop.f32.mrf.mxu1 }
 0x5f8   :  { %v972_v11 = vadd.f32 %v971_v10, %v895_v1 }
 0x5f9   :  { %v1197_v12 = vpop.f32.mrf.mxu1 }
 0x5fa   :  { %v1031_v13 = vmul.f32 -1.442695, %v972_v11 }
 0x5fc   :  { %1218 = vpow2.f32 %v1031_v13 }
 0x609   :  { %v1219_v14 = vpop.eup %1218 }
 0x60a   :  { %v978_v3 = vadd.f32 1.0, %v1219_v14 }
 0x60c   :  { %1220 = vrcp.f32 %v978_v3 }
 0x619   :  { %v1221_v15 = vpop.eup %1220 }
 0x61a   :  { %982 = vst.msk [vmem:[%s1864_s10] sm:$0x1] %vm981_vm3, %v1221_v15 }

</bundles_post_ra>
